<compile_context>
chip_gen: v7x
topology: tpu7x:2x2x1
jax: 0.10.0
libtpu: 0.0.40
codegen_flags: <defaults>
</compile_context>

<pallas_src>
import jax
import jax.numpy as jnp
from jax.experimental import pallas as pl
from jax.experimental.pallas import tpu as pltpu

TOPIC_LEN = 0
IN_FEATURES = 384 * 2 + 2 + 3 + 2 * (TOPIC_LEN + 1)   # 775
HIDDEN = 200
OUT_FEATURES = 1

_DEFAULT_TB = 1024   # batch tile; multiple of 8 (f32 sublane) and 128 (lanes)


def _round_up(n: int, m: int) -> int:
    return ((n + m - 1) // m) * m


def _mlp_kernel(x_ref, w1_ref, b1_ref, w2_ref, b2_ref, o_ref):
    # x_ref : (TB, 775) bf16     w1_ref: (775, 200) bf16
    # b1_ref: (1, 200)  f32      w2_ref: (1, 200)   f32
    # b2_ref: (1, 1)    f32      o_ref : (TB, 1)    f32
    # Layer 1: MXU matmul (bf16 inputs, f32 accumulation) + bias + ReLU (VPU).
    h = jnp.dot(x_ref[...], w1_ref[...], preferred_element_type=jnp.float32)
    h = jnp.maximum(h + b1_ref[...], 0.0)
    # Layer 2 (N=1): elementwise multiply + cross-lane reduce instead of an
    # MXU pass that would use a single output column.
    y = jnp.sum(h * w2_ref[...], axis=-1, keepdims=True) + b2_ref[...]
    o_ref[...] = jax.nn.sigmoid(y).astype(o_ref.dtype)


def net_forward(x, w1, b1, w2, b2, *, tb: int = _DEFAULT_TB):
    """x: (B, 775) float -> (B, 1) f32, matching Net.forward semantics."""
    B = x.shape[0]
    tb = min(tb, _round_up(B, 8))          # never tile larger than the batch
    b_pad = _round_up(B, tb)               # pad batch to a whole number of tiles
    grid = b_pad // tb

    x_bf16 = x.astype(jnp.bfloat16)
    if b_pad != B:
        x_bf16 = jnp.pad(x_bf16, ((0, b_pad - B), (0, 0)))

    cost = pl.CostEstimate(
        flops=2 * b_pad * (IN_FEATURES * HIDDEN + HIDDEN * OUT_FEATURES),
        transcendentals=b_pad,
        bytes_accessed=(b_pad * IN_FEATURES * 2          # x (bf16)
                        + IN_FEATURES * HIDDEN * 2       # w1 (bf16)
                        + 2 * HIDDEN * 4 + 4             # b1, w2, b2 (f32)
                        + b_pad * OUT_FEATURES * 4),     # output (f32)
    )

    out = pl.pallas_call(
        _mlp_kernel,
        out_shape=jax.ShapeDtypeStruct((b_pad, OUT_FEATURES), jnp.float32),
        grid=(grid,),
        in_specs=[
            pl.BlockSpec((tb, IN_FEATURES), lambda i: (i, 0)),        # x tiles
            pl.BlockSpec((IN_FEATURES, HIDDEN), lambda i: (0, 0)),    # w1 resident
            pl.BlockSpec((1, HIDDEN), lambda i: (0, 0)),              # b1 resident
            pl.BlockSpec((1, HIDDEN), lambda i: (0, 0)),              # w2 resident
            pl.BlockSpec((1, OUT_FEATURES), lambda i: (0, 0)),        # b2 resident
        ],
        out_specs=pl.BlockSpec((tb, OUT_FEATURES), lambda i: (i, 0)),
        compiler_params=pltpu.CompilerParams(
            dimension_semantics=("parallel",)),   # megacore sharding on v7x
        cost_estimate=cost,
    )(x_bf16, w1.astype(jnp.bfloat16), b1, w2, b2)

    return out[:B]


def init_params(key):
    """torch.nn.Linear default init (U[-1/sqrt(fan_in), 1/sqrt(fan_in)]).
    w1 stored (in, out) in bf16 (MXU input dtype); w2 stored (1, 200) = torch
    linear2.weight layout; biases f32."""
    k1, k2, k3, k4 = jax.random.split(key, 4)
    bound1 = 1.0 / (IN_FEATURES ** 0.5)
    bound2 = 1.0 / (HIDDEN ** 0.5)
    w1 = jax.random.uniform(k1, (IN_FEATURES, HIDDEN), jnp.float32,
                            minval=-bound1, maxval=bound1).astype(jnp.bfloat16)
    b1 = jax.random.uniform(k2, (1, HIDDEN), jnp.float32,
                            minval=-bound1, maxval=bound1)
    w2 = jax.random.uniform(k3, (1, HIDDEN), jnp.float32,
                            minval=-bound2, maxval=bound2)
    b2 = jax.random.uniform(k4, (1, OUT_FEATURES), jnp.float32,
                            minval=-bound2, maxval=bound2)
    return w1, b1, w2, b2


if __name__ == "__main__":
    key = jax.random.PRNGKey(0)
    k_params, k_x = jax.random.split(key)

    batch = 32
    x = jax.random.normal(k_x, (batch, IN_FEATURES), jnp.float32)
    w1, b1, w2, b2 = init_params(k_params)

    # Default path (single tile) and an explicit multi-tile grid (tb=8 -> 4 steps).
    out_default = jax.block_until_ready(net_forward(x, w1, b1, w2, b2))
    out_tiled = jax.block_until_ready(net_forward(x, w1, b1, w2, b2, tb=8))

    # Pure-JAX reference with layer-1 inputs rounded to bf16 (matches the MXU
    # bf16-input / f32-accumulation path).
    x16 = x.astype(jnp.bfloat16).astype(jnp.float32)
    w1f = w1.astype(jnp.bfloat16).astype(jnp.float32)
    h = jnp.maximum(x16 @ w1f + b1, 0.0)
    ref = jax.nn.sigmoid(h @ w2.T + b2)

    assert out_default.shape == (batch, 1)
    assert out_tiled.shape == (batch, 1)
    assert jnp.allclose(out_default, ref, atol=1e-3, rtol=1e-3)
    assert jnp.allclose(out_tiled, ref, atol=1e-3, rtol=1e-3)

    print("KERNEL_OK")
</pallas_src>

<mosaic_0001>
module attributes {stable_mosaic.version = 11 : i64} {
  func.func @_mlp_kernel(%arg0: i32, %arg1: memref<32x775xbf16, #tpu.memory_space<vmem>>, %arg2: memref<775x200xbf16, #tpu.memory_space<vmem>>, %arg3: memref<1x200xf32, #tpu.memory_space<vmem>>, %arg4: memref<1x200xf32, #tpu.memory_space<vmem>>, %arg5: memref<1x1xf32, #tpu.memory_space<vmem>>, %arg6: memref<32x1xf32, #tpu.memory_space<vmem>>) attributes {dimension_semantics = [#tpu.dimension_semantics<parallel>], iteration_bounds = array<i64: 1>, scalar_prefetch = 0 : i64, scratch_operands = 0 : i64, tpu.core_type = #tpu.core_type<tc>, window_params = [{transform_indices = @transform_0, window_bounds = array<i64: 32, 775>}, {pipeline_mode = #tpu.pipeline_mode<synchronous>, transform_indices = @transform_1, window_bounds = array<i64: 775, 200>}, {pipeline_mode = #tpu.pipeline_mode<synchronous>, transform_indices = @transform_2, window_bounds = array<i64: 1, 200>}, {pipeline_mode = #tpu.pipeline_mode<synchronous>, transform_indices = @transform_3, window_bounds = array<i64: 1, 200>}, {pipeline_mode = #tpu.pipeline_mode<synchronous>, transform_indices = @transform_4, window_bounds = array<i64: 1, 1>}, {transform_indices = @transform_5, window_bounds = array<i64: 32, 1>}]} {
    %c0 = arith.constant 0 : index
    %c0_0 = arith.constant 0 : index
    %0 = vector.load %arg1[%c0, %c0_0] : memref<32x775xbf16, #tpu.memory_space<vmem>>, vector<32x775xbf16>
    %c0_1 = arith.constant 0 : index
    %c0_2 = arith.constant 0 : index
    %1 = vector.load %arg2[%c0_1, %c0_2] : memref<775x200xbf16, #tpu.memory_space<vmem>>, vector<775x200xbf16>
    %cst = arith.constant dense<0.000000e+00> : vector<32x200xf32>
    %2 = tpu.matmul %0, %1, %cst {dimension_numbers = #tpu.dot_dimension_numbers<[1], [0], [0], [1], [0, 0, 1, 1], [], []>} : vector<32x775xbf16>, vector<775x200xbf16>, vector<32x200xf32> -> vector<32x200xf32>
    %c0_3 = arith.constant 0 : index
    %c0_4 = arith.constant 0 : index
    %3 = vector.load %arg3[%c0_3, %c0_4] : memref<1x200xf32, #tpu.memory_space<vmem>>, vector<1x200xf32>
    %4 = vector.broadcast %3 : vector<1x200xf32> to vector<32x200xf32>
    %5 = arith.addf %2, %4 : vector<32x200xf32>
    %cst_5 = arith.constant 0.000000e+00 : f32
    %6 = vector.broadcast %cst_5 : f32 to vector<32x200xf32>
    %7 = arith.maximumf %5, %6 : vector<32x200xf32>
    %c0_6 = arith.constant 0 : index
    %c0_7 = arith.constant 0 : index
    %8 = vector.load %arg4[%c0_6, %c0_7] : memref<1x200xf32, #tpu.memory_space<vmem>>, vector<1x200xf32>
    %9 = vector.broadcast %8 : vector<1x200xf32> to vector<32x200xf32>
    %10 = arith.mulf %7, %9 : vector<32x200xf32>
    %cst_8 = arith.constant dense<0.000000e+00> : vector<32xf32>
    %11 = vector.multi_reduction <add>, %10, %cst_8 [1] : vector<32x200xf32> to vector<32xf32>
    %12 = vector.shape_cast %11 : vector<32xf32> to vector<32x1xf32>
    %c0_9 = arith.constant 0 : index
    %c0_10 = arith.constant 0 : index
    %13 = vector.load %arg5[%c0_9, %c0_10] : memref<1x1xf32, #tpu.memory_space<vmem>>, vector<1x1xf32>
    %14 = vector.broadcast %13 : vector<1x1xf32> to vector<32x1xf32>
    %15 = arith.addf %12, %14 : vector<32x1xf32>
    %16 = arith.negf %15 : vector<32x1xf32>
    %17 = math.exp %16 : vector<32x1xf32>
    %cst_11 = arith.constant 1.000000e+00 : f32
    %18 = vector.broadcast %cst_11 : f32 to vector<32x1xf32>
    %19 = arith.addf %18, %17 : vector<32x1xf32>
    %20 = arith.divf %18, %19 : vector<32x1xf32>
    %c0_12 = arith.constant 0 : index
    %c0_13 = arith.constant 0 : index
    %21 = vector.load %arg6[%c0_12, %c0_13] : memref<32x1xf32, #tpu.memory_space<vmem>>, vector<32x1xf32>
    tpu.vector_store %arg6[%c0_12, %c0_13], %20 {strides = array<i32>} : memref<32x1xf32, #tpu.memory_space<vmem>>, vector<32x1xf32>,
    return
  }
  func.func @transform_0(%arg0: i32) -> (i32, i32) {
    %c0_i32 = arith.constant 0 : i32
    %c0_i32_0 = arith.constant 0 : i32
    return %arg0, %c0_i32 : i32, i32
  }
  func.func @transform_1(%arg0: i32) -> (i32, i32) {
    %c0_i32 = arith.constant 0 : i32
    %c0_i32_0 = arith.constant 0 : i32
    %c0_i32_1 = arith.constant 0 : i32
    return %c0_i32, %c0_i32_0 : i32, i32
  }
  func.func @transform_2(%arg0: i32) -> (i32, i32) {
    %c0_i32 = arith.constant 0 : i32
    %c0_i32_0 = arith.constant 0 : i32
    %c0_i32_1 = arith.constant 0 : i32
    return %c0_i32, %c0_i32_0 : i32, i32
  }
  func.func @transform_3(%arg0: i32) -> (i32, i32) {
    %c0_i32 = arith.constant 0 : i32
    %c0_i32_0 = arith.constant 0 : i32
    %c0_i32_1 = arith.constant 0 : i32
    return %c0_i32, %c0_i32_0 : i32, i32
  }
  func.func @transform_4(%arg0: i32) -> (i32, i32) {
    %c0_i32 = arith.constant 0 : i32
    %c0_i32_0 = arith.constant 0 : i32
    %c0_i32_1 = arith.constant 0 : i32
    return %c0_i32, %c0_i32_0 : i32, i32
  }
  func.func @transform_5(%arg0: i32) -> (i32, i32) {
    %c0_i32 = arith.constant 0 : i32
    %c0_i32_0 = arith.constant 0 : i32
    return %arg0, %c0_i32 : i32, i32
  }
}

</mosaic_0001>

<bundles_post_ra>
// kernel: tpu_custom_call.1
= control target key start
LH: loop header
LB: loop body
LE: loop exit
PB: predicated region body
PF: predicated region fallthrough
CT: control target
= control target key end

     0   :  { %vm710_vm0 = vcmask 1042432   ;;  %vm711_vm1 = vcmask 1043456   ;;  %vm703_vm2 = vcmask 56320   ;;  %vm960_vm3 = vcmask 588800   ;;  %s1748_s1 = inlined_call_operand.vmem [shape: bf16[775,200], index: 1, kind: input, shape index: {}]   ;;  %s1749_s0 = inlined_call_operand.vmem [shape: bf16[32,775], index: 0, kind: input, shape index: {}]   ;;  %s1750_s4 = inlined_call_operand.<no memory space> [shape: f32[1,1], index: 4, kind: input, shape index: {}]   ;;  %s1751_s2 = inlined_call_operand.vmem [shape: f32[1,200], index: 2, kind: input, shape index: {}]   ;;  %s1752_s3 = inlined_call_operand.vmem [shape: f32[1,200], index: 3, kind: input, shape index: {}]   ;;  %s1753_s5 = inlined_call_operand.vmem [shape: f32[32,1], index: 5, kind: output, shape index: {}]  }
   0x1   :  { %v1174_v0 = vld [vmem:[%s1748_s1 + $0x4] ss:$8 sps:$4 sm:$0xff]   ;;  %v1176_v1 = vld [vmem:[%s1748_s1] ss:$8 sps:$4 sm:$0xff]   ;;  %v1177_v2 = vld [vmem:[%s1748_s1 + $0x14] ss:$8 sps:$4 sm:$0xff]  }
   0x2   :  { %720 = vmatprep.subr.bf16.mxu1 %v1174_v0  ;;  %v1179_v3 = vld [vmem:[%s1748_s1 + $0x10] ss:$8 sps:$4 sm:$0xff]   ;;  %v1180_v4 = vld [vmem:[%s1748_s1 + $0x24] ss:$8 sps:$4 sm:$0xff]   ;;  %v1182_v5 = vld [vmem:[%s1748_s1 + $0x20] ss:$8 sps:$4 sm:$0xff]  }
   0x3   :  { %721 = vmatpush1.bf16.msra.mxu1 %v1176_v1  ;;  %v1183_v6 = vld [vmem:[%s1748_s1 + $0x34] ss:$8 sps:$4 sm:$0xff]   ;;  %v1185_v7 = vld [vmem:[%s1748_s1 + $0x30] ss:$8 sps:$4 sm:$0xff]   ;;  %v1198_v8 = vld [vmem:[%s1748_s1 + $0x204] ss:$8 sps:$4 sm:$0xff]  }
   0x4   :  { %722 = vmatprep.subr.bf16.mxu1 %v1177_v2  ;;  %v1186_v9 = vld [vmem:[%s1748_s1 + $0x44] ss:$8 sps:$4 sm:$0xff]   ;;  %v1202_v10 = vld [vmem:[%s1748_s1 + $0x200] ss:$8 sps:$4 sm:$0xff]   ;;  %826 = vmatprep.subr.bf16.mxu0 %v1198_v8  ;;  %v1204_v11 = vld [vmem:[%s1748_s1 + $0x214] ss:$8 sps:$4 sm:$0xff]  }
   0x5   :  { %827 = vmatpush1.bf16.msra.mxu0 %v1202_v10  ;;  %v1188_v12 = vld [vmem:[%s1748_s1 + $0x40] ss:$8 sps:$4 sm:$0xff]   ;;  %v1189_v13 = vld [vmem:[%s1748_s1 + $0x54] ss:$8 sps:$4 sm:$0xff]   ;;  %v1208_v14 = vld [vmem:[%s1748_s1 + $0x210] ss:$8 sps:$4 sm:$0xff]  }
   0x6   :  { %828 = vmatprep.subr.bf16.mxu0 %v1204_v11  ;;  %v1210_v15 = vld [vmem:[%s1748_s1 + $0x224] ss:$8 sps:$4 sm:$0xff]   ;;  %v1191_v16 = vld [vmem:[%s1748_s1 + $0x50] ss:$8 sps:$4 sm:$0xff]   ;;  %v1214_v17 = vld [vmem:[%s1748_s1 + $0x220] ss:$8 sps:$4 sm:$0xff]  }
   0x7   :  { %723 = vmatpush1.bf16.msra.mxu1 %v1179_v3  ;;  %v1216_v18 = vld [vmem:[%s1748_s1 + $0x234] ss:$8 sps:$4 sm:$0xff]   ;;  %v1192_v19 = vld [vmem:[%s1748_s1 + $0x64] ss:$8 sps:$4 sm:$0xff]   ;;  %v1220_v20 = vld [vmem:[%s1748_s1 + $0x230] ss:$8 sps:$4 sm:$0xff]  }
   0x8   :  { %724 = vmatprep.subr.bf16.mxu1 %v1180_v4  ;;  %v1194_v21 = vld [vmem:[%s1748_s1 + $0x60] ss:$8 sps:$4 sm:$0xff]   ;;  %v1222_v22 = vld [vmem:[%s1748_s1 + $0x244] ss:$8 sps:$4 sm:$0xff]   ;;  %v1195_v23 = vld [vmem:[%s1748_s1 + $0x74] ss:$8 sps:$4 sm:$0xff]  }
   0x9   :  { %829 = vmatpush1.bf16.msra.mxu0 %v1208_v14  ;;  %v1197_v24 = vld [vmem:[%s1748_s1 + $0x70] ss:$8 sps:$4 sm:$0xff]   ;;  %v1226_v25 = vld [vmem:[%s1748_s1 + $0x240] ss:$8 sps:$4 sm:$0xff]   ;;  %v1228_v26 = vld [vmem:[%s1748_s1 + $0x254] ss:$8 sps:$4 sm:$0xff]  }
   0xa   :  { %830 = vmatprep.subr.bf16.mxu0 %v1210_v15  ;;  %v1200_v27 = vld [vmem:[%s1748_s1 + $0x84] ss:$8 sps:$4 sm:$0xff]   ;;  %v1232_v28 = vld [vmem:[%s1748_s1 + $0x250] ss:$8 sps:$4 sm:$0xff]   ;;  %v1203_v29 = vld [vmem:[%s1748_s1 + $0x80] ss:$8 sps:$4 sm:$0xff]  }
   0xb   :  { %725 = vmatpush1.bf16.msra.mxu1 %v1182_v5  ;;  %v1234_v30 = vld [vmem:[%s1748_s1 + $0x264] ss:$8 sps:$4 sm:$0xff]   ;;  %v1206_v31 = vld [vmem:[%s1748_s1 + $0x94] ss:$8 sps:$4 sm:$0xff]   ;;  %v1238_v32 = vld [vmem:[%s1748_s1 + $0x260] ss:$8 sps:$4 sm:$0xff]  }
   0xc   :  { %726 = vmatprep.subr.bf16.mxu1 %v1183_v6  ;;  %v1250_v33 = vld [vmem:[%s1749_s0 + $0x4] ss:$28 sps:$4 sm:$0xff]   ;;  %v1209_v34 = vld [vmem:[%s1748_s1 + $0x90] ss:$8 sps:$4 sm:$0xff]   ;;  %v1240_v35 = vld [vmem:[%s1748_s1 + $0x274] ss:$8 sps:$4 sm:$0xff]  }
   0xd   :  { %831 = vmatpush1.bf16.msra.mxu0 %v1214_v17  ;;  %v1212_v36 = vld [vmem:[%s1748_s1 + $0xa4] ss:$8 sps:$4 sm:$0xff]   ;;  %752 = vmatprep.mubr.bf16.mxu1 %v1250_v33  ;;  %v1215_v37 = vld [vmem:[%s1748_s1 + $0xa0] ss:$8 sps:$4 sm:$0xff]   ;;  %v1244_v38 = vld [vmem:[%s1748_s1 + $0x270] ss:$8 sps:$4 sm:$0xff]  }
   0xe   :  { %832 = vmatprep.subr.bf16.mxu0 %v1216_v18  ;;  %v1246_v39 = vld [vmem:[%s1748_s1 + $0x284] ss:$8 sps:$4 sm:$0xff]   ;;  %v1218_v40 = vld [vmem:[%s1748_s1 + $0xb4] ss:$8 sps:$4 sm:$0xff]   ;;  %v1254_v41 = vld [vmem:[%s1748_s1 + $0x280] ss:$8 sps:$4 sm:$0xff]  }
   0xf   :  { %727 = vmatpush1.bf16.msra.mxu1 %v1185_v7  ;;  %v1221_v42 = vld [vmem:[%s1748_s1 + $0xb0] ss:$8 sps:$4 sm:$0xff]   ;;  %v1255_v43 = vld [vmem:[%s1748_s1 + $0x294] ss:$8 sps:$4 sm:$0xff]   ;;  %v1224_v44 = vld [vmem:[%s1748_s1 + $0xc4] ss:$8 sps:$4 sm:$0xff]  }
  0x10   :  { %728 = vmatprep.subr.bf16.mxu1 %v1186_v9  ;;  %v1227_v45 = vld [vmem:[%s1748_s1 + $0xc0] ss:$8 sps:$4 sm:$0xff]   ;;  %v1260_v46 = vld [vmem:[%s1748_s1 + $0x290] ss:$8 sps:$4 sm:$0xff]   ;;  %v1261_v47 = vld [vmem:[%s1748_s1 + $0x2a4] ss:$8 sps:$4 sm:$0xff]  }
  0x11   :  { %833 = vmatpush1.bf16.msra.mxu0 %v1220_v20  ;;  %v1230_v48 = vld [vmem:[%s1748_s1 + $0xd4] ss:$8 sps:$4 sm:$0xff]   ;;  %v1266_v49 = vld [vmem:[%s1748_s1 + $0x2a0] ss:$8 sps:$4 sm:$0xff]   ;;  %v1233_v50 = vld [vmem:[%s1748_s1 + $0xd0] ss:$8 sps:$4 sm:$0xff]  }
  0x12   :  { %834 = vmatprep.subr.bf16.mxu0 %v1222_v22  ;;  %v1267_v51 = vld [vmem:[%s1748_s1 + $0x2b4] ss:$8 sps:$4 sm:$0xff]   ;;  %v1236_v52 = vld [vmem:[%s1748_s1 + $0xe4] ss:$8 sps:$4 sm:$0xff]   ;;  %v1239_v53 = vld [vmem:[%s1748_s1 + $0xe0] ss:$8 sps:$4 sm:$0xff]  }
  0x13   :  { %729 = vmatpush1.bf16.msra.mxu1 %v1188_v12  ;;  %v1272_v54 = vld [vmem:[%s1748_s1 + $0x2b0] ss:$8 sps:$4 sm:$0xff]   ;;  %v1273_v55 = vld [vmem:[%s1748_s1 + $0x2c4] ss:$8 sps:$4 sm:$0xff]   ;;  %v1242_v57 = vld [vmem:[%s1748_s1 + $0xf4] ss:$8 sps:$4 sm:$0xff]  }
  0x14   :  { %730 = vmatprep.subr.bf16.mxu1 %v1189_v13  ;;  %v1299_v56 = vld [vmem:[%s1749_s0 + $0x14] ss:$28 sps:$4 sm:$0xff]   ;;  %v1278_v58 = vld [vmem:[%s1748_s1 + $0x2c0] ss:$8 sps:$4 sm:$0xff]   ;;  %v1253_v61 = vld [vmem:[%s1748_s1 + $0x104] ss:$8 sps:$4 sm:$0xff]  }
  0x15   :  { %835 = vmatpush1.bf16.msra.mxu0 %v1226_v25  ;;  %858 = vmatprep.mubr.bf16.mxu0 %v1299_v56  ;;  %v1245_v59 = vld [vmem:[%s1748_s1 + $0xf0] ss:$8 sps:$4 sm:$0xff]   ;;  %v1279_v60 = vld [vmem:[%s1748_s1 + $0x2d4] ss:$8 sps:$4 sm:$0xff]   ;;  %v1251_v63 = vld [vmem:[%s1748_s1 + $0x100] ss:$8 sps:$4 sm:$0xff]  }
  0x16   :  { %836 = vmatprep.subr.bf16.mxu0 %v1228_v26  ;;  %v1248_v62 = vld [vmem:[%s1749_s0] ss:$28 sps:$4 sm:$0xff]   ;;  %v1284_v1 = vld [vmem:[%s1748_s1 + $0x2d0] ss:$8 sps:$4 sm:$0xff]   ;;  %v1285_v2 = vld [vmem:[%s1748_s1 + $0x2e4] ss:$8 sps:$4 sm:$0xff]  }
  0x17   :  { %731 = vmatpush1.bf16.msra.mxu1 %v1191_v16  ;;  %v1259_v0 = vld [vmem:[%s1748_s1 + $0x114] ss:$8 sps:$4 sm:$0xff]   ;;  %v135_v3 = vld [vmem:[%s1748_s1 + $0x300] sm:$0xff]  ;;  %v1257_v4 = vld [vmem:[%s1748_s1 + $0x110] ss:$8 sps:$4 sm:$0xff]   ;;  %v1356_v5 = vmov 65535  }
  0x18   :  { %732 = vmatprep.subr.bf16.mxu1 %v1192_v19  ;;  %v712_v6 = vsel %vm710_vm0, 4294967295, %v1356_v5  ;;  %v1290_v7 = vld [vmem:[%s1748_s1 + $0x2e0] ss:$8 sps:$4 sm:$0xff]   ;;  %v1291_v8 = vld [vmem:[%s1748_s1 + $0x2f4] ss:$8 sps:$4 sm:$0xff]   ;;  %v1132_v9 = vcombine.high %v135_v3, %v135_v3  ;;  %v1131_v14 = vcombine.low %v135_v3, %v135_v3  ;;  %vm1012_vm4 = vcmask 7168  }
  0x19   :  { %837 = vmatpush1.bf16.msra.mxu0 %v1232_v28  ;;  %v1324_v10 = vld [vmem:[%s1749_s0 + $0x3c] ss:$28 sps:$4 sm:$0xff]   ;;  %v1265_v11 = vld [vmem:[%s1748_s1 + $0x124] ss:$8 sps:$4 sm:$0xff]   ;;  %v713_v12 = vsel %vm711_vm1, %v712_v6, 0 }
  0x1a   :  { %838 = vmatprep.subr.bf16.mxu0 %v1234_v30  ;;  %v1296_v13 = vld [vmem:[%s1748_s1 + $0x2f0] ss:$8 sps:$4 sm:$0xff]   ;;  %v1263_v16 = vld [vmem:[%s1748_s1 + $0x120] ss:$8 sps:$4 sm:$0xff]   ;;  %v718_v17 = vand.u32 %v1132_v9, %v713_v12  ;;  %v1271_v18 = vld [vmem:[%s1748_s1 + $0x134] ss:$8 sps:$4 sm:$0xff]   ;;  %v715_v22 = vand.u32 %v1131_v14, %v713_v12 }
  0x1b   :  { %733 = vmatpush1.bf16.msra.mxu1 %v1194_v21  ;;  %v1327_v15 = vld [vmem:[%s1749_s0 + $0x38] ss:$28 sps:$4 sm:$0xff]   ;;  %v1336_v19 = vld [vmem:[%s1749_s0 + $0xc] ss:$28 sps:$4 sm:$0xff]   ;;  %v1357_v30 = vmov 0  }
  0x1c   :  { %734 = vmatprep.subr.bf16.mxu1 %v1195_v23  ;;  %v1297_v20 = vld [vmem:[%s1749_s0 + $0x10] ss:$28 sps:$4 sm:$0xff]   ;;  %v1275_v25 = vld [vmem:[%s1748_s1 + $0x140] ss:$8 sps:$4 sm:$0xff]   ;;  %v1283_v26 = vld [vmem:[%s1748_s1 + $0x154] ss:$8 sps:$4 sm:$0xff]  }
  0x1d   :  { %839 = vmatpush1.bf16.msra.mxu0 %v1238_v32  ;;  %v1306_v21 = vld [vmem:[%s1749_s0 + $0x4c] ss:$28 sps:$4 sm:$0xff]   ;;  %v1269_v23 = vld [vmem:[%s1748_s1 + $0x130] ss:$8 sps:$4 sm:$0xff]   ;;  %v1295_v32 = vld [vmem:[%s1748_s1 + $0x174] ss:$8 sps:$4 sm:$0xff]  }
  0x1e   :  { %840 = vmatprep.subr.bf16.mxu0 %v1240_v35  ;;  %v1281_v28 = vld [vmem:[%s1748_s1 + $0x150] ss:$8 sps:$4 sm:$0xff]   ;;  %v1302_v35 = vld [vmem:[%s1748_s1 + $0x184] ss:$8 sps:$4 sm:$0xff]   ;;  %v136_v3 = vld [vmem:[%s1751_s2] sm:$0x3] }
  0x1f   :  { %735 = vmatpush1.bf16.msra.mxu1 %v1197_v24  ;;  %v1277_v24 = vld [vmem:[%s1748_s1 + $0x144] ss:$8 sps:$4 sm:$0xff]   ;;  %v1317_v33 = vld [vmem:[%s1749_s0 + $0x18] ss:$28 sps:$4 sm:$0xff]  }
  0x20   :  { %736 = vmatprep.subr.bf16.mxu1 %v1200_v27  ;;  %v1308_v27 = vld [vmem:[%s1749_s0 + $0x48] ss:$28 sps:$4 sm:$0xff]  }
  0x21   :  { %841 = vmatpush1.bf16.msra.mxu0 %v1244_v38  ;;  %v1326_v38 = vld [vmem:[%s1749_s0 + $0x50] ss:$28 sps:$4 sm:$0xff]  }
  0x22   :  { %842 = vmatprep.subr.bf16.mxu0 %v1246_v39  ;;  %v1303_v39 = vld [vmem:[%s1748_s1 + $0x190] ss:$8 sps:$4 sm:$0xff]  }
  0x23   :  { %737 = vmatpush1.bf16.msra.mxu1 %v1203_v29  ;;  %v1289_v29 = vld [vmem:[%s1748_s1 + $0x164] ss:$8 sps:$4 sm:$0xff]  }
  0x24   :  { %738 = vmatprep.subr.bf16.mxu1 %v1206_v31  ;;  %v1287_v31 = vld [vmem:[%s1748_s1 + $0x160] ss:$8 sps:$4 sm:$0xff]  }
  0x25   :  { %843 = vmatpush1.bf16.msra.mxu0 %v1254_v41  ;;  %v1309_v41 = vld [vmem:[%s1748_s1 + $0x1a0] ss:$8 sps:$4 sm:$0xff]  }
  0x26   :  { %844 = vmatprep.subr.bf16.mxu0 %v1255_v43  ;;  %v1314_v43 = vld [vmem:[%s1748_s1 + $0x1b0] ss:$8 sps:$4 sm:$0xff]  }
  0x27   :  { %739 = vmatpush1.bf16.msra.mxu1 %v1209_v34  ;;  %v1293_v34 = vld [vmem:[%s1748_s1 + $0x170] ss:$8 sps:$4 sm:$0xff]  }
  0x28   :  { %740 = vmatprep.subr.bf16.mxu1 %v1212_v36  ;;  %v1300_v36 = vld [vmem:[%s1748_s1 + $0x180] ss:$8 sps:$4 sm:$0xff]  }
  0x29   :  { %845 = vmatpush1.bf16.msra.mxu0 %v1260_v46  ;;  %v1323_v46 = vld [vmem:[%s1748_s1 + $0x1d4] ss:$8 sps:$4 sm:$0xff]  }
  0x2a   :  { %846 = vmatprep.subr.bf16.mxu0 %v1261_v47  ;;  %v1321_v47 = vld [vmem:[%s1748_s1 + $0x1d0] ss:$8 sps:$4 sm:$0xff]  }
  0x2b   :  { %741 = vmatpush1.bf16.msra.mxu1 %v1215_v37  ;;  %v1305_v37 = vld [vmem:[%s1748_s1 + $0x194] ss:$8 sps:$4 sm:$0xff]  }
  0x2c   :  { %742 = vmatprep.subr.bf16.mxu1 %v1218_v40  ;;  %v1311_v40 = vld [vmem:[%s1748_s1 + $0x1a4] ss:$8 sps:$4 sm:$0xff]  }
  0x2d   :  { %847 = vmatpush1.bf16.msra.mxu0 %v1266_v49  ;;  %v1328_v49 = vld [vmem:[%s1748_s1 + $0x1e0] ss:$8 sps:$4 sm:$0xff]  }
  0x2e   :  { %848 = vmatprep.subr.bf16.mxu0 %v1267_v51  ;;  %v1331_v51 = vld [vmem:[%s1748_s1 + $0x1f0] ss:$8 sps:$4 sm:$0xff]  }
  0x2f   :  { %743 = vmatpush1.bf16.msra.mxu1 %v1221_v42  ;;  %v1316_v42 = vld [vmem:[%s1748_s1 + $0x1b4] ss:$8 sps:$4 sm:$0xff]  }
  0x30   :  { %744 = vmatprep.subr.bf16.mxu1 %v1224_v44  ;;  %v1320_v44 = vld [vmem:[%s1748_s1 + $0x1c4] ss:$8 sps:$4 sm:$0xff]  }
  0x31   :  { %849 = vmatpush1.bf16.msra.mxu0 %v1272_v54  ;;  %v1339_v54 = vld [vmem:[%s1749_s0 + $0x40] ss:$28 sps:$4 sm:$0xff]  }
  0x32   :  { %850 = vmatprep.subr.bf16.mxu0 %v1273_v55  ;;  %v10_v55 = vstv %s1750_s4 }
  0x33   :  { %745 = vmatpush1.bf16.msra.mxu1 %v1227_v45  ;;  %v1318_v45 = vld [vmem:[%s1748_s1 + $0x1c0] ss:$8 sps:$4 sm:$0xff]   ;;  %11 = vst [vmem:[#allocation2] sm:$0x1] %v10_v55 }
  0x34   :  { %746 = vmatprep.subr.bf16.mxu1 %v1230_v48  ;;  %v1330_v48 = vld [vmem:[%s1748_s1 + $0x1e4] ss:$8 sps:$4 sm:$0xff]  }
  0x35   :  { %851 = vmatpush1.bf16.msra.mxu0 %v1278_v58 }
  0x36   :  { %852 = vmatprep.subr.bf16.mxu0 %v1279_v60 }
  0x37   :  { %747 = vmatpush1.bf16.msra.mxu1 %v1233_v50  ;;  %v1333_v50 = vld [vmem:[%s1748_s1 + $0x1f4] ss:$8 sps:$4 sm:$0xff]  }
  0x38   :  { %748 = vmatprep.subr.bf16.mxu1 %v1236_v52  ;;  %v1334_v52 = vld [vmem:[%s1749_s0 + $0x8] ss:$28 sps:$4 sm:$0xff]  }
  0x39   :  { %853 = vmatpush1.bf16.msra.mxu0 %v1284_v1 }
  0x3a   :  { %854 = vmatprep.subr.bf16.mxu0 %v1285_v2 }
  0x3b   :  { %749 = vmatpush1.bf16.msra.mxu1 %v1239_v53  ;;  %v1337_v53 = vld [vmem:[%s1749_s0 + $0x44] ss:$28 sps:$4 sm:$0xff]  }
  0x3c   :  { %750 = vmatprep.subr.bf16.mxu1 %v1242_v57 }
  0x3d   :  { %855 = vmatpush1.bf16.msra.mxu0 %v1290_v7 }
  0x3e   :  { %856 = vmatprep.subr.bf16.mxu0 %v1291_v8 }
  0x3f   :  { %751 = vmatpush1.bf16.msra.mxu1 %v1245_v59 }
  0x40   :  { %773 = vmatprep.subr.bf16.mxu1 %v1253_v61 }
  0x41   :  { %857 = vmatpush1.bf16.msra.mxu0 %v1296_v13 }
  0x42   :  { %753 = vmatmul.mubr.bf16.vlgmr.msra.gmra.mrb[0].mxu1 %v1248_v62  ;;  %879 = vmatprep.subr.bf16.mxu0 %v718_v17 }
  0x43   :  { %774 = vmatpush1.bf16.msra.mxu1 %v1251_v63  ;;  %762 = vmatprep.mubr.bf16.mxu1 %v1324_v10  ;;  %v940_v10 = vld [vmem:[%s1752_s3] sm:$0x3] }
  0x44   :  { %775 = vmatprep.subr.bf16.mxu1 %v1259_v0  ;;  %859 = vmatmul.mubr.bf16.vlgmr.msra.gmra.mrb[0].mxu0 %v1297_v20  ;;  %v138_v0 = vlaneseq }
  0x45   :  { %868 = vmatprep.mubr.bf16.mxu0 %v1306_v21  ;;  %880 = vmatpush1.bf16.msra.mxu0 %v715_v22 }
  0x46   :  { %v139_v1 = vshrl.u32 %v138_v0, 7 }
  0x47   :  { %776 = vmatpush1.bf16.msra.mxu1 %v1257_v4 }
  0x48   :  { %777 = vmatprep.subr.bf16.mxu1 %v1265_v11  ;;  %v140_v2 = vsub.s32 0, %v139_v1  ;;  %v144_v4 = vsub.s32 1, %v139_v1 }
  0x4a   :  { %763 = vmatmul.mubr.bf16.gmra.mrb[4].mxu1 %v1327_v15  ;;  %v141_v5 = vrot.slane %v136_v3, %v140_v2  ;;  %v145_v6 = vrot.slane %v136_v3, %v144_v4  ;;  %v945_v21 = vrot.slane %v940_v10, %v140_v2 }
  0x4b   :  { %778 = vmatpush1.bf16.msra.mxu1 %v1263_v16  ;;  %805 = vmatprep.mubr.bf16.mxu1 %v1336_v19 }
  0x4c   :  { %779 = vmatprep.subr.bf16.mxu1 %v1271_v18  ;;  %869 = vmatmul.mubr.bf16.gmra.mrb[4].mxu0 %v1308_v27  ;;  %v949_v18 = vrot.slane %v940_v10, %v144_v4 }
  0x4d   :  { %911 = vmatprep.mubr.bf16.mxu0 %v1357_v30 }
  0x4f   :  { %780 = vmatpush1.bf16.msra.mxu1 %v1269_v23 }
  0x50   :  { %781 = vmatprep.subr.bf16.mxu1 %v1277_v24 }
  0x53   :  { %782 = vmatpush1.bf16.msra.mxu1 %v1275_v25 }
  0x54   :  { %783 = vmatprep.subr.bf16.mxu1 %v1283_v26  ;;  %1133 = vmatmul.mubr.msk.bf16.vlgmr.msra.gmra.mrb[0].mxu0 %vm703_vm2, %v1317_v33 }
  0x55   :  { %921 = vmatprep.mubr.bf16.mxu0 %v1357_v30 }
  0x57   :  { %784 = vmatpush1.bf16.msra.mxu1 %v1281_v28 }
  0x58   :  { %785 = vmatprep.subr.bf16.mxu1 %v1289_v29 }
  0x5b   :  { %786 = vmatpush1.bf16.msra.mxu1 %v1287_v31 }
  0x5c   :  { %787 = vmatprep.subr.bf16.mxu1 %v1295_v32  ;;  %1134 = vmatmul.mubr.msk.bf16.gmra.mrb[4].mxu0 %vm703_vm2, %v1326_v38 }
  0x5f   :  { %788 = vmatpush1.bf16.msra.mxu1 %v1293_v34 }
  0x60   :  { %789 = vmatprep.subr.bf16.mxu1 %v1302_v35 }
  0x63   :  { %790 = vmatpush1.bf16.msra.mxu1 %v1300_v36 }
  0x64   :  { %791 = vmatprep.subr.bf16.mxu1 %v1305_v37 }
  0x67   :  { %792 = vmatpush1.bf16.msra.mxu1 %v1303_v39 }
  0x68   :  { %793 = vmatprep.subr.bf16.mxu1 %v1311_v40 }
  0x6b   :  { %794 = vmatpush1.bf16.msra.mxu1 %v1309_v41 }
  0x6c   :  { %795 = vmatprep.subr.bf16.mxu1 %v1316_v42 }
  0x6f   :  { %796 = vmatpush1.bf16.msra.mxu1 %v1314_v43 }
  0x70   :  { %797 = vmatprep.subr.bf16.mxu1 %v1320_v44 }
  0x73   :  { %798 = vmatpush1.bf16.msra.mxu1 %v1318_v45 }
  0x74   :  { %799 = vmatprep.subr.bf16.mxu1 %v1323_v46 }
  0x77   :  { %800 = vmatpush1.bf16.msra.mxu1 %v1321_v47 }
  0x78   :  { %801 = vmatprep.subr.bf16.mxu1 %v1330_v48 }
  0x7b   :  { %802 = vmatpush1.bf16.msra.mxu1 %v1328_v49 }
  0x7c   :  { %803 = vmatprep.subr.bf16.mxu1 %v1333_v50 }
  0x7f   :  { %804 = vmatpush1.bf16.msra.mxu1 %v1331_v51 }
  0x82   :  { %806 = vmatmul.mubr.bf16.vlgmr.msra.gmra.mrb[0].mxu1 %v1334_v52 }
  0x83   :  { %815 = vmatprep.mubr.bf16.mxu1 %v1337_v53 }
  0x8a   :  { %816 = vmatmul.mubr.bf16.gmra.mrb[4].mxu1 %v1339_v54 }
 0x127   :  { %v913_v56 = vpop.f32.mrb[0].mxu0 }
 0x128   :  { %v915_v57 = vpop.f32.mrb[1].mxu0 }
 0x129   :  { %v917_v58 = vpop.f32.mrb[2].mxu0 }
 0x12a   :  { %v919_v59 = vpop.f32.mrb[3].mxu0 }
 0x12f   :  { %v923_v60 = vpop.f32.mrb[4].mxu0 }
 0x130   :  { %v925_v61 = vpop.f32.mrb[5].mxu0 }
 0x131   :  { %v927_v62 = vpop.f32.mrb[6].mxu0 }
 0x132   :  { %v929_v63 = vpop.f32.mrb[7].mxu0 }
 0x155   :  { %v807_v7 = vpop.f32.mrb[0].mxu1 }
 0x156   :  { %v1140_v8 = vadd.f32 %v807_v7, %v141_v5  ;;  %v809_v9 = vpop.f32.mrb[1].mxu1 }
 0x157   :  { %v1142_v11 = vadd.f32 %v809_v9, %v145_v6  ;;  %v811_v12 = vpop.f32.mrb[2].mxu1 }
 0x158   :  { %v1141_v13 = vadd.f32 %v1140_v8, %v913_v56  ;;  %v1144_v14 = vadd.f32 %v811_v12, %v141_v5  ;;  %v813_v15 = vpop.f32.mrb[3].mxu1 }
 0x159   :  { %v1143_v16 = vadd.f32 %v1142_v11, %v915_v57  ;;  %v1146_v17 = vadd.f32 %v813_v15, %v145_v6 }
 0x15a   :  { %v932_v19 = vmax.f32 %v1141_v13, 0.0  ;;  %v1145_v20 = vadd.f32 %v1144_v14, %v917_v58  ;;  %v1135_v58 = vld [vmem:[#allocation2] ss:$0 sm:$0xff] }
 0x15b   :  { %v933_v22 = vmax.f32 %v1143_v16, 0.0  ;;  %v1147_v23 = vadd.f32 %v1146_v17, %v919_v59 }
 0x15c   :  { %v934_v24 = vmax.f32 %v1145_v20, 0.0  ;;  %v952_v30 = vmul.f32 %v945_v21, %v932_v19 }
 0x15d   :  { %v935_v25 = vmax.f32 %v1147_v23, 0.0  ;;  %v817_v26 = vpop.f32.mrb[4].mxu1  ;;  %v953_v27 = vmul.f32 %v949_v18, %v933_v22 }
 0x15e   :  { %v1148_v28 = vadd.f32 %v817_v26, %v141_v5  ;;  %v819_v29 = vpop.f32.mrb[5].mxu1  ;;  %v954_v39 = vmul.f32 %v945_v21, %v934_v24 }
 0x15f   :  { %v1150_v31 = vadd.f32 %v819_v29, %v145_v6  ;;  %v821_v32 = vpop.f32.mrb[6].mxu1  ;;  %v961_v33 = vsel %vm960_vm3, %v953_v27, 0.0  ;;  %v955_v34 = vmul.f32 %v949_v18, %v935_v25 }
 0x160   :  { %v1149_v35 = vadd.f32 %v1148_v28, %v923_v60  ;;  %v1152_v36 = vadd.f32 %v821_v32, %v141_v5  ;;  %v823_v37 = vpop.f32.mrb[7].mxu1  ;;  %v962_v38 = vadd.f32 %v961_v33, %v952_v30 }
 0x161   :  { %v1151_v40 = vadd.f32 %v1150_v31, %v925_v61  ;;  %v1154_v41 = vadd.f32 %v823_v37, %v145_v6  ;;  %v965_v42 = vsel %vm960_vm3, %v955_v34, 0.0 }
 0x162   :  { %v936_v43 = vmax.f32 %v1149_v35, 0.0  ;;  %v1153_v44 = vadd.f32 %v1152_v36, %v927_v62  ;;  %963 = vadd.xlane.f32.xlu0 %v962_v38  ;;  %v966_v45 = vadd.f32 %v965_v42, %v954_v39 }
 0x163   :  { %v937_v46 = vmax.f32 %v1151_v40, 0.0  ;;  %v1155_v47 = vadd.f32 %v1154_v41, %v929_v63 }
 0x164   :  { %v938_v48 = vmax.f32 %v1153_v44, 0.0  ;;  %v956_v51 = vmul.f32 %v945_v21, %v936_v43 }
 0x165   :  { %v939_v49 = vmax.f32 %v1155_v47, 0.0  ;;  %v957_v50 = vmul.f32 %v949_v18, %v937_v46 }
 0x166   :  { %967 = vadd.xlane.f32.xlu0 %v966_v45  ;;  %v958_v55 = vmul.f32 %v945_v21, %v938_v48 }
 0x167   :  { %v969_v52 = vsel %vm960_vm3, %v957_v50, 0.0  ;;  %v959_v53 = vmul.f32 %v949_v18, %v939_v49 }
 0x168   :  { %v970_v54 = vadd.f32 %v969_v52, %v956_v51 }
 0x169   :  { %v973_v56 = vsel %vm960_vm3, %v959_v53, 0.0 }
 0x16a   :  { %971 = vadd.xlane.f32.xlu1 %v970_v54  ;;  %v974_v57 = vadd.f32 %v973_v56, %v958_v55 }
 0x16e   :  { %975 = vadd.xlane.f32.xlu1 %v974_v57 }
 0x1ef   :  { %v964_v59 = vpop.xlane.xlu0 %963 }
 0x1f0   :  { %v984_v60 = vadd.f32 %v1135_v58, %v964_v59 }
 0x1f2   :  { %v1136_v61 = vmul.f32 -1.442695, %v984_v60 }
 0x1f3   :  { %v968_v62 = vpop.xlane.xlu0 %967 }
 0x1f4   :  { %1340 = vpow2.f32 %v1136_v61  ;;  %v985_v63 = vadd.f32 %v1135_v58, %v968_v62 }
 0x1f6   :  { %v1137_v0 = vmul.f32 -1.442695, %v985_v63 }
 0x1f7   :  { %v972_v1 = vpop.xlane.xlu1 %971 }
 0x1f8   :  { %1342 = vpow2.f32 %v1137_v0  ;;  %v986_v2 = vadd.f32 %v1135_v58, %v972_v1 }
 0x1fa   :  { %v1138_v3 = vmul.f32 -1.442695, %v986_v2 }
 0x1fb   :  { %v976_v4 = vpop.xlane.xlu1 %975 }
 0x1fc   :  { %1344 = vpow2.f32 %v1138_v3  ;;  %v987_v5 = vadd.f32 %v1135_v58, %v976_v4 }
 0x1fe   :  { %v1341_v6 = vpop.eup %1340  ;;  %v1139_v7 = vmul.f32 -1.442695, %v987_v5 }
 0x1ff   :  { %v1000_v8 = vadd.f32 1.0, %v1341_v6 }
 0x200   :  { %1346 = vpow2.f32 %v1139_v7 }
 0x201   :  { %1348 = vrcp.f32 %v1000_v8 }
 0x202   :  { %v1343_v9 = vpop.eup %1342 }
 0x203   :  { %v1001_v10 = vadd.f32 1.0, %v1343_v9 }
 0x205   :  { %1350 = vrcp.f32 %v1001_v10 }
 0x206   :  { %v1345_v11 = vpop.eup %1344 }
 0x207   :  { %v1002_v12 = vadd.f32 1.0, %v1345_v11 }
 0x209   :  { %1352 = vrcp.f32 %v1002_v12 }
 0x20a   :  { %v1347_v13 = vpop.eup %1346 }
 0x20b   :  { %v1349_v14 = vpop.eup %1348  ;;  %v1003_v15 = vadd.f32 1.0, %v1347_v13 }
 0x20c   :  { %1013 = vst.msk [vmem:[%s1753_s5] sm:$0xff] %vm1012_vm4, %v1349_v14 }
 0x20d   :  { %1354 = vrcp.f32 %v1003_v15 }
 0x20f   :  { %v1351_v16 = vpop.eup %1350 }
 0x210   :  { %1014 = vst.msk [vmem:[%s1753_s5 + $0x8] sm:$0xff] %vm1012_vm4, %v1351_v16 }
 0x213   :  { %v1353_v17 = vpop.eup %1352 }
 0x214   :  { %1015 = vst.msk [vmem:[%s1753_s5 + $0x10] sm:$0xff] %vm1012_vm4, %v1353_v17 }
 0x217   :  { %v1355_v18 = vpop.eup %1354 }
 0x218   :  { %1016 = vst.msk [vmem:[%s1753_s5 + $0x18] sm:$0xff] %vm1012_vm4, %v1355_v18 }

</bundles_post_ra>
